<compile_context>
chip_gen: v7x
topology: tpu7x:2x2x1
jax: 0.10.0
libtpu: 0.0.40
codegen_flags: <defaults>
</compile_context>

<pallas_src>
import numpy as np
import jax
import jax.numpy as jnp
from jax.experimental import pallas as pl
from jax.experimental.pallas import tpu as pltpu

EPS = 1e-5

# ---------------------------------------------------------------------------
# Packed parameter layout: one [176, 16] f32 array, one 16-row slab per block.
# Every block starts at lane 0 and a sublane offset that is a multiple of 8,
# so the in-kernel slices are tile-aligned (zero-cost views).
#   name    : (slab_index, rows, cols)
_SLAB = 16
_LAYOUT = {
    "fc1_w": (0, 10, 6),
    "fc2_w": (1, 10, 10),
    "fc3_w": (2, 6, 10),
    "fc4_w": (3, 2, 6),
    "bn1_g": (4, 10, 1),
    "bn1_b": (5, 10, 1),
    "bn2_g": (6, 10, 1),
    "bn2_b": (7, 10, 1),
    "bn3_g": (8, 6, 1),
    "bn3_b": (9, 6, 1),
    "fc4_b": (10, 2, 1),
}
_P_ROWS, _P_COLS = len(_LAYOUT) * _SLAB, 16


def _blk(p_ref, name):
    """Tile-aligned static slice of one packed parameter block."""
    slab, r, c = _LAYOUT[name]
    off = slab * _SLAB
    return p_ref[off:off + r, 0:c]


def mlp_kernel(x_ref, p_ref, o_ref):
    x = x_ref[...]                          # [B, 6] as handed in by the caller

    w1 = _blk(p_ref, "fc1_w")               # [10, 6]
    w2 = _blk(p_ref, "fc2_w")               # [10, 10]
    w3 = _blk(p_ref, "fc3_w")               # [6, 10]
    w4 = _blk(p_ref, "fc4_w")               # [2, 6]
    g1, be1 = _blk(p_ref, "bn1_g"), _blk(p_ref, "bn1_b")   # [10, 1]
    g2, be2 = _blk(p_ref, "bn2_g"), _blk(p_ref, "bn2_b")   # [10, 1]
    g3, be3 = _blk(p_ref, "bn3_g"), _blk(p_ref, "bn3_b")   # [6, 1]
    b4 = _blk(p_ref, "fc4_b")                              # [2, 1]

    B = x.shape[0]
    inv_n = 1.0 / B                         # static batch size
    ones_col = jnp.ones((B, 1), jnp.float32)  # MXU lane-reduction vector

    def bn_tanh(h, gamma, beta):
        # Training-mode BatchNorm1d (batch mean, biased variance), fused into
        # one FMA per element: tanh(h * scale + shift).
        # Batch stats computed on the (idle) MXU: [F,B] @ [B,1] -> [F,1],
        # instead of XLU cross-lane reductions.
        mu = jnp.dot(h, ones_col, preferred_element_type=jnp.float32) * inv_n
        ex2 = jnp.dot(h * h, ones_col, preferred_element_type=jnp.float32) * inv_n
        var = jnp.maximum(ex2 - mu * mu, 0.0)   # clamp one-pass cancellation
        scale = gamma * jax.lax.rsqrt(var + EPS)            # [F,1]
        shift = beta - mu * scale                           # [F,1]
        return jnp.tanh(h * scale + shift)                  # [F,B]

    # Layer 1: contract w1[10,6] dim 1 with x[B,6] dim 1 -> [10, B]
    # (feature-major activation produced directly; no host/in-kernel transpose).
    h = bn_tanh(
        jax.lax.dot_general(w1, x, (((1,), (1,)), ((), ())),
                            preferred_element_type=jnp.float32),
        g1, be1)
    # Pre-BN biases omitted: they cancel exactly in (h - mu).
    h = bn_tanh(jnp.dot(w2, h, preferred_element_type=jnp.float32), g2, be2)
    h = bn_tanh(jnp.dot(w3, h, preferred_element_type=jnp.float32), g3, be3)
    logits = jnp.dot(w4, h, preferred_element_type=jnp.float32) + b4    # [2,B]

    # log_softmax over the 2 classes: lse = max + log1p(exp(-|r0 - r1|)),
    # a single exp on the EUP, pure per-lane work, no cross-lane reduce.
    r0 = logits[0:1, :]
    r1 = logits[1:2, :]
    m = jnp.maximum(r0, r1)
    lse = m + jnp.log1p(jnp.exp(-jnp.abs(r0 - r1)))          # [1,B]
    o_ref[...] = logits - lse                                # [2,B]


def pack_params(params):
    """Host-side (numpy) one-time packing into a single [176, 16] f32 array.

    Call once at setup and cache the result; no per-forward XLA ops.
    fc1_b / fc2_b / fc3_b are intentionally omitted (they cancel exactly in
    training-mode BatchNorm).
    """
    P = np.zeros((_P_ROWS, _P_COLS), np.float32)
    for name, (slab, r, c) in _LAYOUT.items():
        v = np.asarray(params[name], np.float32).reshape(r, c)
        P[slab * _SLAB: slab * _SLAB + r, 0:c] = v
    return jnp.asarray(P)


@jax.jit
def network_forward(x, packed_params):
    """x: [B, 6] float32 (PyTorch layout); packed_params: output of pack_params.

    Returns [B, 2] log-probs.  Everything (pallas_call + output transpose)
    compiles into one executable.
    """
    B = x.shape[0]
    vmem = pl.BlockSpec(memory_space=pltpu.MemorySpace.VMEM)
    cost = pl.CostEstimate(
        flops=600 * B,
        transcendentals=32 * B,
        bytes_accessed=(B * 6 + B * 2 + _P_ROWS * _P_COLS) * 4,
    )
    out_fb = pl.pallas_call(
        mlp_kernel,
        out_shape=jax.ShapeDtypeStruct((2, B), jnp.float32),
        in_specs=[vmem, vmem],
        out_specs=vmem,
        cost_estimate=cost,
    )(x.astype(jnp.float32), packed_params)
    return out_fb.T                      # back to [B, 2] (module interface)


def init_params(key):
    """Deterministic init mimicking PyTorch defaults (uniform +-1/sqrt(fan_in);
    BatchNorm gamma=1, beta=0)."""
    dims = [(6, 10), (10, 10), (10, 6), (6, 2)]
    params = {}
    keys = jax.random.split(key, 2 * len(dims))
    for i, (fan_in, fan_out) in enumerate(dims):
        bound = 1.0 / (fan_in ** 0.5)
        params[f"fc{i+1}_w"] = jax.random.uniform(
            keys[2 * i], (fan_out, fan_in), jnp.float32, -bound, bound)
        params[f"fc{i+1}_b"] = jax.random.uniform(
            keys[2 * i + 1], (fan_out,), jnp.float32, -bound, bound)
    for i, nf in enumerate([10, 10, 6]):
        params[f"bn{i+1}_g"] = jnp.ones((nf,), jnp.float32)
        params[f"bn{i+1}_b"] = jnp.zeros((nf,), jnp.float32)
    return params


def _reference_forward(x, params):
    """Pure-JAX reference matching the PyTorch module (biases included)."""
    def bn_tanh(h, g, b):
        mu = jnp.mean(h, axis=0, keepdims=True)
        var = jnp.mean((h - mu) ** 2, axis=0, keepdims=True)
        return jnp.tanh((h - mu) / jnp.sqrt(var + EPS) * g + b)

    h = bn_tanh(x @ params["fc1_w"].T + params["fc1_b"],
                params["bn1_g"], params["bn1_b"])
    h = bn_tanh(h @ params["fc2_w"].T + params["fc2_b"],
                params["bn2_g"], params["bn2_b"])
    h = bn_tanh(h @ params["fc3_w"].T + params["fc3_b"],
                params["bn3_g"], params["bn3_b"])
    logits = h @ params["fc4_w"].T + params["fc4_b"]
    return jax.nn.log_softmax(logits, axis=1)


if __name__ == "__main__":
    key = jax.random.PRNGKey(0)
    k_param, k_x = jax.random.split(key)

    B = 128  # one lane-width of batch; features fixed by the module (6->...->2)
    x = jax.random.normal(k_x, (B, 6), jnp.float32)
    params = init_params(k_param)

    # One-time, host-side packing; cached and reused for every forward call.
    P = pack_params(params)

    out = jax.block_until_ready(network_forward(x, P))

    ref = _reference_forward(x, params)
    assert out.shape == (B, 2)
    # Tolerance slightly relaxed vs the two-pass reference: kernel uses the
    # one-pass (sum / sum-of-squares) variance.
    assert jnp.allclose(out, ref, atol=1e-4, rtol=1e-4), "mismatch vs reference"
    # log_softmax rows should exp-sum to 1
    assert jnp.allclose(jnp.sum(jnp.exp(out), axis=1), 1.0, atol=1e-5)

    print("KERNEL_OK")
</pallas_src>

<mosaic_0001>
module attributes {stable_mosaic.version = 11 : i64} {
  func.func @mlp_kernel(%arg0: memref<128x6xf32, #tpu.memory_space<vmem>>, %arg1: memref<176x16xf32, #tpu.memory_space<vmem>>, %arg2: memref<2x128xf32, #tpu.memory_space<vmem>>) attributes {dimension_semantics = [], scalar_prefetch = 0 : i64, scratch_operands = 0 : i64, tpu.core_type = #tpu.core_type<tc>} {
    %c0 = arith.constant 0 : index
    %c0_0 = arith.constant 0 : index
    %0 = vector.load %arg0[%c0, %c0_0] : memref<128x6xf32, #tpu.memory_space<vmem>>, vector<128x6xf32>
    %c0_1 = arith.constant 0 : index
    %c0_2 = arith.constant 0 : index
    %1 = vector.load %arg1[%c0_1, %c0_2] : memref<176x16xf32, #tpu.memory_space<vmem>>, vector<10x6xf32>
    %c16 = arith.constant 16 : index
    %c0_3 = arith.constant 0 : index
    %2 = vector.load %arg1[%c16, %c0_3] : memref<176x16xf32, #tpu.memory_space<vmem>>, vector<10x10xf32>
    %c32 = arith.constant 32 : index
    %c0_4 = arith.constant 0 : index
    %3 = vector.load %arg1[%c32, %c0_4] : memref<176x16xf32, #tpu.memory_space<vmem>>, vector<6x10xf32>
    %c48 = arith.constant 48 : index
    %c0_5 = arith.constant 0 : index
    %4 = vector.load %arg1[%c48, %c0_5] : memref<176x16xf32, #tpu.memory_space<vmem>>, vector<2x6xf32>
    %c64 = arith.constant 64 : index
    %c0_6 = arith.constant 0 : index
    %5 = vector.load %arg1[%c64, %c0_6] : memref<176x16xf32, #tpu.memory_space<vmem>>, vector<10x1xf32>
    %c80 = arith.constant 80 : index
    %c0_7 = arith.constant 0 : index
    %6 = vector.load %arg1[%c80, %c0_7] : memref<176x16xf32, #tpu.memory_space<vmem>>, vector<10x1xf32>
    %c96 = arith.constant 96 : index
    %c0_8 = arith.constant 0 : index
    %7 = vector.load %arg1[%c96, %c0_8] : memref<176x16xf32, #tpu.memory_space<vmem>>, vector<10x1xf32>
    %c112 = arith.constant 112 : index
    %c0_9 = arith.constant 0 : index
    %8 = vector.load %arg1[%c112, %c0_9] : memref<176x16xf32, #tpu.memory_space<vmem>>, vector<10x1xf32>
    %c128 = arith.constant 128 : index
    %c0_10 = arith.constant 0 : index
    %9 = vector.load %arg1[%c128, %c0_10] : memref<176x16xf32, #tpu.memory_space<vmem>>, vector<6x1xf32>
    %c144 = arith.constant 144 : index
    %c0_11 = arith.constant 0 : index
    %10 = vector.load %arg1[%c144, %c0_11] : memref<176x16xf32, #tpu.memory_space<vmem>>, vector<6x1xf32>
    %c160 = arith.constant 160 : index
    %c0_12 = arith.constant 0 : index
    %11 = vector.load %arg1[%c160, %c0_12] : memref<176x16xf32, #tpu.memory_space<vmem>>, vector<2x1xf32>
    %cst = arith.constant 1.000000e+00 : f32
    %12 = vector.broadcast %cst : f32 to vector<128x1xf32>
    %cst_13 = arith.constant dense<0.000000e+00> : vector<10x128xf32>
    %13 = tpu.matmul %1, %0, %cst_13 {dimension_numbers = #tpu.dot_dimension_numbers<[1], [1], [0], [0], [0, 0, 1, 0], [], []>} : vector<10x6xf32>, vector<128x6xf32>, vector<10x128xf32> -> vector<10x128xf32>
    %cst_14 = arith.constant dense<0.000000e+00> : vector<10x1xf32>
    %14 = tpu.matmul %13, %12, %cst_14 {dimension_numbers = #tpu.dot_dimension_numbers<[1], [0], [0], [1], [0, 0, 1, 1], [], []>} : vector<10x128xf32>, vector<128x1xf32>, vector<10x1xf32> -> vector<10x1xf32>
    %cst_15 = arith.constant 7.812500e-03 : f32
    %15 = vector.broadcast %cst_15 : f32 to vector<10x1xf32>
    %16 = arith.mulf %14, %15 : vector<10x1xf32>
    %17 = arith.mulf %13, %13 : vector<10x128xf32>
    %cst_16 = arith.constant dense<0.000000e+00> : vector<10x1xf32>
    %18 = tpu.matmul %17, %12, %cst_16 {dimension_numbers = #tpu.dot_dimension_numbers<[1], [0], [0], [1], [0, 0, 1, 1], [], []>} : vector<10x128xf32>, vector<128x1xf32>, vector<10x1xf32> -> vector<10x1xf32>
    %cst_17 = arith.constant 7.812500e-03 : f32
    %19 = vector.broadcast %cst_17 : f32 to vector<10x1xf32>
    %20 = arith.mulf %18, %19 : vector<10x1xf32>
    %21 = arith.mulf %16, %16 : vector<10x1xf32>
    %22 = arith.subf %20, %21 : vector<10x1xf32>
    %cst_18 = arith.constant 0.000000e+00 : f32
    %23 = vector.broadcast %cst_18 : f32 to vector<10x1xf32>
    %24 = arith.maximumf %22, %23 : vector<10x1xf32>
    %cst_19 = arith.constant 9.99999974E-6 : f32
    %25 = vector.broadcast %cst_19 : f32 to vector<10x1xf32>
    %26 = arith.addf %24, %25 : vector<10x1xf32>
    %27 = math.rsqrt %26 : vector<10x1xf32>
    %28 = arith.mulf %5, %27 : vector<10x1xf32>
    %29 = arith.mulf %16, %28 : vector<10x1xf32>
    %30 = arith.subf %6, %29 : vector<10x1xf32>
    %31 = vector.broadcast %28 : vector<10x1xf32> to vector<10x128xf32>
    %32 = arith.mulf %13, %31 : vector<10x128xf32>
    %33 = vector.broadcast %30 : vector<10x1xf32> to vector<10x128xf32>
    %34 = arith.addf %32, %33 : vector<10x128xf32>
    %35 = math.tanh %34 : vector<10x128xf32>
    %cst_20 = arith.constant dense<0.000000e+00> : vector<10x128xf32>
    %36 = tpu.matmul %2, %35, %cst_20 {dimension_numbers = #tpu.dot_dimension_numbers<[1], [0], [0], [1], [0, 0, 1, 1], [], []>} : vector<10x10xf32>, vector<10x128xf32>, vector<10x128xf32> -> vector<10x128xf32>
    %cst_21 = arith.constant dense<0.000000e+00> : vector<10x1xf32>
    %37 = tpu.matmul %36, %12, %cst_21 {dimension_numbers = #tpu.dot_dimension_numbers<[1], [0], [0], [1], [0, 0, 1, 1], [], []>} : vector<10x128xf32>, vector<128x1xf32>, vector<10x1xf32> -> vector<10x1xf32>
    %cst_22 = arith.constant 7.812500e-03 : f32
    %38 = vector.broadcast %cst_22 : f32 to vector<10x1xf32>
    %39 = arith.mulf %37, %38 : vector<10x1xf32>
    %40 = arith.mulf %36, %36 : vector<10x128xf32>
    %cst_23 = arith.constant dense<0.000000e+00> : vector<10x1xf32>
    %41 = tpu.matmul %40, %12, %cst_23 {dimension_numbers = #tpu.dot_dimension_numbers<[1], [0], [0], [1], [0, 0, 1, 1], [], []>} : vector<10x128xf32>, vector<128x1xf32>, vector<10x1xf32> -> vector<10x1xf32>
    %cst_24 = arith.constant 7.812500e-03 : f32
    %42 = vector.broadcast %cst_24 : f32 to vector<10x1xf32>
    %43 = arith.mulf %41, %42 : vector<10x1xf32>
    %44 = arith.mulf %39, %39 : vector<10x1xf32>
    %45 = arith.subf %43, %44 : vector<10x1xf32>
    %cst_25 = arith.constant 0.000000e+00 : f32
    %46 = vector.broadcast %cst_25 : f32 to vector<10x1xf32>
    %47 = arith.maximumf %45, %46 : vector<10x1xf32>
    %cst_26 = arith.constant 9.99999974E-6 : f32
    %48 = vector.broadcast %cst_26 : f32 to vector<10x1xf32>
    %49 = arith.addf %47, %48 : vector<10x1xf32>
    %50 = math.rsqrt %49 : vector<10x1xf32>
    %51 = arith.mulf %7, %50 : vector<10x1xf32>
    %52 = arith.mulf %39, %51 : vector<10x1xf32>
    %53 = arith.subf %8, %52 : vector<10x1xf32>
    %54 = vector.broadcast %51 : vector<10x1xf32> to vector<10x128xf32>
    %55 = arith.mulf %36, %54 : vector<10x128xf32>
    %56 = vector.broadcast %53 : vector<10x1xf32> to vector<10x128xf32>
    %57 = arith.addf %55, %56 : vector<10x128xf32>
    %58 = math.tanh %57 : vector<10x128xf32>
    %cst_27 = arith.constant dense<0.000000e+00> : vector<6x128xf32>
    %59 = tpu.matmul %3, %58, %cst_27 {dimension_numbers = #tpu.dot_dimension_numbers<[1], [0], [0], [1], [0, 0, 1, 1], [], []>} : vector<6x10xf32>, vector<10x128xf32>, vector<6x128xf32> -> vector<6x128xf32>
    %cst_28 = arith.constant dense<0.000000e+00> : vector<6x1xf32>
    %60 = tpu.matmul %59, %12, %cst_28 {dimension_numbers = #tpu.dot_dimension_numbers<[1], [0], [0], [1], [0, 0, 1, 1], [], []>} : vector<6x128xf32>, vector<128x1xf32>, vector<6x1xf32> -> vector<6x1xf32>
    %cst_29 = arith.constant 7.812500e-03 : f32
    %61 = vector.broadcast %cst_29 : f32 to vector<6x1xf32>
    %62 = arith.mulf %60, %61 : vector<6x1xf32>
    %63 = arith.mulf %59, %59 : vector<6x128xf32>
    %cst_30 = arith.constant dense<0.000000e+00> : vector<6x1xf32>
    %64 = tpu.matmul %63, %12, %cst_30 {dimension_numbers = #tpu.dot_dimension_numbers<[1], [0], [0], [1], [0, 0, 1, 1], [], []>} : vector<6x128xf32>, vector<128x1xf32>, vector<6x1xf32> -> vector<6x1xf32>
    %cst_31 = arith.constant 7.812500e-03 : f32
    %65 = vector.broadcast %cst_31 : f32 to vector<6x1xf32>
    %66 = arith.mulf %64, %65 : vector<6x1xf32>
    %67 = arith.mulf %62, %62 : vector<6x1xf32>
    %68 = arith.subf %66, %67 : vector<6x1xf32>
    %cst_32 = arith.constant 0.000000e+00 : f32
    %69 = vector.broadcast %cst_32 : f32 to vector<6x1xf32>
    %70 = arith.maximumf %68, %69 : vector<6x1xf32>
    %cst_33 = arith.constant 9.99999974E-6 : f32
    %71 = vector.broadcast %cst_33 : f32 to vector<6x1xf32>
    %72 = arith.addf %70, %71 : vector<6x1xf32>
    %73 = math.rsqrt %72 : vector<6x1xf32>
    %74 = arith.mulf %9, %73 : vector<6x1xf32>
    %75 = arith.mulf %62, %74 : vector<6x1xf32>
    %76 = arith.subf %10, %75 : vector<6x1xf32>
    %77 = vector.broadcast %74 : vector<6x1xf32> to vector<6x128xf32>
    %78 = arith.mulf %59, %77 : vector<6x128xf32>
    %79 = vector.broadcast %76 : vector<6x1xf32> to vector<6x128xf32>
    %80 = arith.addf %78, %79 : vector<6x128xf32>
    %81 = math.tanh %80 : vector<6x128xf32>
    %cst_34 = arith.constant dense<0.000000e+00> : vector<2x128xf32>
    %82 = tpu.matmul %4, %81, %cst_34 {dimension_numbers = #tpu.dot_dimension_numbers<[1], [0], [0], [1], [0, 0, 1, 1], [], []>} : vector<2x6xf32>, vector<6x128xf32>, vector<2x128xf32> -> vector<2x128xf32>
    %83 = vector.broadcast %11 : vector<2x1xf32> to vector<2x128xf32>
    %84 = arith.addf %82, %83 : vector<2x128xf32>
    %85 = vector.extract_strided_slice %84 {offsets = [0, 0], sizes = [1, 128], strides = [1, 1]} : vector<2x128xf32> to vector<1x128xf32>
    %86 = vector.extract_strided_slice %84 {offsets = [1, 0], sizes = [1, 128], strides = [1, 1]} : vector<2x128xf32> to vector<1x128xf32>
    %87 = arith.maximumf %85, %86 : vector<1x128xf32>
    %88 = arith.subf %85, %86 : vector<1x128xf32>
    %89 = math.absf %88 : vector<1x128xf32>
    %cst_35 = arith.constant 0.000000e+00 : f32
    %90 = vector.broadcast %cst_35 : f32 to vector<1x128xf32>
    %91 = arith.subf %90, %89 : vector<1x128xf32>
    %92 = math.exp %91 : vector<1x128xf32>
    %93 = math.log1p %92 : vector<1x128xf32>
    %94 = arith.addf %87, %93 : vector<1x128xf32>
    %95 = vector.broadcast %94 : vector<1x128xf32> to vector<2x128xf32>
    %96 = arith.subf %84, %95 : vector<2x128xf32>
    %c0_36 = arith.constant 0 : index
    %c0_37 = arith.constant 0 : index
    %97 = vector.load %arg2[%c0_36, %c0_37] : memref<2x128xf32, #tpu.memory_space<vmem>>, vector<2x128xf32>
    tpu.vector_store %arg2[%c0_36, %c0_37], %96 {strides = array<i32>} : memref<2x128xf32, #tpu.memory_space<vmem>>, vector<2x128xf32>,
    return
  }
}

</mosaic_0001>

<bundles_post_ra>
// kernel: network_forward.1
= control target key start
LH: loop header
LB: loop body
LE: loop exit
PB: predicated region body
PF: predicated region fallthrough
CT: control target
= control target key end

     0   :  { %vm45_vm0 = vcmask 48128   ;;  %v1651_v6 = vmov 1.0|1.0   ;;  %s1946_s0 = inlined_call_operand.vmem [shape: f32[128,6], index: 0, kind: input, shape index: {}]   ;;  %s1947_s1 = inlined_call_operand.vmem [shape: f32[176,16], index: 1, kind: input, shape index: {}]   ;;  %s1948_s2 = inlined_call_operand.hbm [shape: f32[2,128], index: 2, kind: output, shape index: {}]  }
   0x1   :  { %v12_v0 = vld [vmem:[%s1946_s0] sm:$0xff]  ;;  %v13_v1 = vld [vmem:[%s1946_s0 + $0x8] sm:$0xff]  ;;  %v14_v2 = vld [vmem:[%s1946_s0 + $0x10] sm:$0xff]  ;;  %1488 = vmatprep.subr.bf16.mxu1 %v1651_v6 }
   0x2   :  { %v1440_v3 = vpack.c.bf16 %v13_v1, %v12_v0  ;;  %vm1684_vm1 = vmpackc.low %vm45_vm0, %vm45_vm0  ;;  %v15_v5 = vld [vmem:[%s1946_s0 + $0x18] sm:$0xff]  ;;  %1489 = vmatpush3.bf16.msra.mxu1 %v1651_v6  ;;  %v28_v8 = vld [vmem:[%s1947_s1] sm:$0xff] }
   0x3   :  { %v1446_v7 = vpack.c.bf16 %v15_v5, %v14_v2  ;;  %1490 = vmatprep.subr.bf16.mxu1 %v1651_v6  ;;  %v16_v9 = vld [vmem:[%s1946_s0 + $0x20] sm:$0xff]  ;;  %v17_v10 = vld [vmem:[%s1946_s0 + $0x28] sm:$0xff]  ;;  %1208 = vmatprep.mubr.msk.f32.mxu0 %vm45_vm0, %v28_v8 }
   0x4   :  { %1442 = vmatprep.subr.msk.bf16.mxu0 %vm1684_vm1, %v1440_v3 }
   0x5   :  { %1445 = vmatpush3.bf16.xpose.msk.msra.mxu0 %vm1684_vm1, %v1440_v3 }
   0x6   :  { %1448 = vmatprep.subr.msk.bf16.mxu0 %vm1684_vm1, %v1446_v7  ;;  %1491 = vmatpush3.bf16.msra.mxu1 %v1651_v6 }
   0x7   :  { %7 = vsyncpa [#allocation3], 0  ;;  %1492 = vmatprep.subr.bf16.mxu1 %v1651_v6  ;;  %v1452_v11 = vpack.c.bf16 %v17_v10, %v16_v9  ;;  %v18_v12 = vld [vmem:[%s1946_s0 + $0x30] sm:$0xff]  ;;  %v19_v13 = vld [vmem:[%s1946_s0 + $0x38] sm:$0xff]  ;;  %v1652_v32 = vmov 0   ;;  %vm373_vm2 = vcmask 80896  }
   0x8   :  { %v1458_v14 = vpack.c.bf16 %v19_v13, %v18_v12  ;;  %v20_v15 = vld [vmem:[%s1946_s0 + $0x40] sm:$0xff]  ;;  %v21_v16 = vld [vmem:[%s1946_s0 + $0x48] sm:$0xff]  ;;  %v22_v18 = vld [vmem:[%s1946_s0 + $0x50] sm:$0xff]  ;;  %1601 = vset.pattern.permute.xlu0 %v1652_v32  ;;  %1602 = vset.pattern.permute.xlu1 %v1652_v32  ;;  %vm380_vm3 = vcmask 1041408   ;;  %vm1653_vm4 = vmmov 1   ;;  %vm1655_vm6 = vmmov 0  }
   0x9   :  { %v1464_v17 = vpack.c.bf16 %v21_v16, %v20_v15  ;;  %v23_v19 = vld [vmem:[%s1946_s0 + $0x58] sm:$0xff]  ;;  %v24_v21 = vld [vmem:[%s1946_s0 + $0x60] sm:$0xff]  ;;  %v25_v22 = vld [vmem:[%s1946_s0 + $0x68] sm:$0xff]  ;;  %vm905_vm7 = vcmask 1045504  }
   0xa   :  { %1493 = vmatpush3.bf16.msra.mxu1 %v1651_v6  ;;  %v1470_v20 = vpack.c.bf16 %v23_v19, %v22_v18  ;;  %v1476_v23 = vpack.c.bf16 %v25_v22, %v24_v21  ;;  %v26_v24 = vld [vmem:[%s1946_s0 + $0x70] sm:$0xff]  ;;  %v27_v25 = vld [vmem:[%s1946_s0 + $0x78] sm:$0xff]  ;;  %v29_v27 = vld [vmem:[%s1947_s1 + $0x8] sm:$0x3] }
   0xb   :  { %1494 = vmatprep.subr.bf16.mxu1 %v1651_v6  ;;  %v1482_v26 = vpack.c.bf16 %v27_v25, %v26_v24  ;;  %v35_v49 = vld [vmem:[%s1947_s1 + $0x48] sm:$0x3]  ;;  %v34_v50 = vld [vmem:[%s1947_s1 + $0x40] sm:$0xff]  ;;  %v36_v55 = vld [vmem:[%s1947_s1 + $0x50] sm:$0xff] }
   0xc   :  { %v37_v59 = vld [vmem:[%s1947_s1 + $0x58] sm:$0x3]  ;;  %v30_v61 = vld [vmem:[%s1947_s1 + $0x10] sm:$0xff]  ;;  %vm1843_vm5 = vmpackc.low %vm380_vm3, %vm1653_vm4 }
   0xd   :  { %1451 = vmatpush3.bf16.xpose.msk.msra.mxu0 %vm1684_vm1, %v1446_v7  ;;  %v39_v32 = vld [vmem:[%s1947_s1 + $0x68] sm:$0x3] }
   0xe   :  { %1454 = vmatprep.subr.msk.bf16.mxu0 %vm1684_vm1, %v1452_v11  ;;  %1495 = vmatpush3.bf16.msra.mxu1 %v1651_v6 }
   0xf   :  { %1496 = vmatprep.subr.bf16.mxu1 %v1651_v6 }
  0x12   :  { %1497 = vmatpush3.bf16.msra.mxu1 %v1651_v6 }
  0x13   :  { %1498 = vmatprep.subr.bf16.mxu1 %v1651_v6 }
  0x15   :  { %1457 = vmatpush3.bf16.xpose.msk.msra.mxu0 %vm1684_vm1, %v1452_v11  ;;  %v31_v11 = vld [vmem:[%s1947_s1 + $0x18] sm:$0x3] }
  0x16   :  { %1460 = vmatprep.subr.msk.bf16.mxu0 %vm1684_vm1, %v1458_v14  ;;  %1499 = vmatpush3.bf16.msra.mxu1 %v1651_v6 }
  0x17   :  { %1500 = vmatprep.subr.bf16.mxu1 %v1651_v6 }
  0x1a   :  { %1501 = vmatpush3.bf16.msra.mxu1 %v1651_v6 }
  0x1b   :  { %1502 = vmatprep.subr.bf16.mxu1 %v1651_v6 }
  0x1d   :  { %1463 = vmatpush3.bf16.xpose.msk.msra.mxu0 %vm1684_vm1, %v1458_v14 }
  0x1e   :  { %1466 = vmatprep.subr.msk.bf16.mxu0 %vm1684_vm1, %v1464_v17  ;;  %1503 = vmatpush3.bf16.msra.mxu1 %v1651_v6 }
  0x1f   :  { %1504 = vmatprep.subr.bf16.mxu1 %v1651_v6 }
  0x25   :  { %1469 = vmatpush3.bf16.xpose.msk.msra.mxu0 %vm1684_vm1, %v1464_v17 }
  0x26   :  { %1472 = vmatprep.subr.msk.bf16.mxu0 %vm1684_vm1, %v1470_v20 }
  0x2d   :  { %1475 = vmatpush3.bf16.xpose.msk.msra.mxu0 %vm1684_vm1, %v1470_v20 }
  0x2e   :  { %1478 = vmatprep.subr.msk.bf16.mxu0 %vm1684_vm1, %v1476_v23 }
  0x35   :  { %1481 = vmatpush3.bf16.xpose.msk.msra.mxu0 %vm1684_vm1, %v1476_v23 }
  0x36   :  { %1484 = vmatprep.subr.msk.bf16.mxu0 %vm1684_vm1, %v1482_v26 }
  0x3d   :  { %1487 = vmatpush3.bf16.xpose.msk.msra.mxu0 %vm1684_vm1, %v1482_v26 }
  0x44   :  { %1209 = vmatmul.mubr.msk.f32.vlgmr.msra.gmra.mrb[0].mxu0 %vm45_vm0, %v29_v27 }
  0x45   :  { %1285 = vmatprep.mubr.msk.f32.mxu0 %vm373_vm2, %v30_v61 }
 0x117   :  { %v1784_v28 = vpop.f32.mrb[0].mxu0 }
 0x118   :  { %v1786_v29 = vpop.f32.mrb[1].mxu0  ;;  %v253_v31 = vmul.f32 %v1784_v28, %v1784_v28 }
 0x119   :  { %v252_v30 = vmul.f32 %v1786_v29, %v1786_v29  ;;  %1243 = vmatprep.mubr.f32.mxu1 %v1786_v29 }
 0x11a   :  { %1244 = vmatmul.mubr.f32.vlgmr.msra.gmra.mrb[0].mxu1 %v1784_v28 }
 0x11b   :  { %1505 = vmatpush3.bf16.msra.mxu1 %v1651_v6  ;;  %1278 = vmatprep.mubr.f32.mxu1 %v252_v30 }
 0x11c   :  { %1506 = vmatprep.subr.bf16.mxu1 %v1651_v6 }
 0x11f   :  { %1507 = vmatpush3.bf16.msra.mxu1 %v1651_v6 }
 0x120   :  { %1508 = vmatprep.subr.bf16.mxu1 %v1651_v6 }
 0x123   :  { %1509 = vmatpush3.bf16.msra.mxu1 %v1651_v6 }
 0x124   :  { %1510 = vmatprep.subr.bf16.mxu1 %v1651_v6 }
 0x127   :  { %1511 = vmatpush3.bf16.msra.mxu1 %v1651_v6 }
 0x128   :  { %1512 = vmatprep.subr.bf16.mxu1 %v1651_v6 }
 0x12b   :  { %1513 = vmatpush3.bf16.msra.mxu1 %v1651_v6 }
 0x12c   :  { %1514 = vmatprep.subr.bf16.mxu1 %v1651_v6 }
 0x12f   :  { %1515 = vmatpush3.bf16.msra.mxu1 %v1651_v6 }
 0x130   :  { %1516 = vmatprep.subr.bf16.mxu1 %v1651_v6 }
 0x133   :  { %1517 = vmatpush3.bf16.msra.mxu1 %v1651_v6 }
 0x134   :  { %1518 = vmatprep.subr.bf16.mxu1 %v1651_v6 }
 0x137   :  { %1519 = vmatpush3.bf16.msra.mxu1 %v1651_v6 }
 0x138   :  { %1526 = vmatprep.subr.bf16.mxu1 %v1651_v6 }
 0x13a   :  { %1279 = vmatmul.mubr.f32.vlgmr.msra.gmra.mrb[2].mxu1 %v253_v31 }
 0x13b   :  { %1527 = vmatpush3.bf16.msra.mxu1 %v1651_v6 }
 0x13c   :  { %1528 = vmatprep.subr.bf16.mxu1 %v1651_v6 }
 0x13f   :  { %1529 = vmatpush3.bf16.msra.mxu1 %v1651_v6 }
 0x140   :  { %1530 = vmatprep.subr.bf16.mxu1 %v1651_v6 }
 0x143   :  { %1531 = vmatpush3.bf16.msra.mxu1 %v1651_v6 }
 0x144   :  { %1532 = vmatprep.subr.bf16.mxu1 %v1651_v6 }
 0x147   :  { %1533 = vmatpush3.bf16.msra.mxu1 %v1651_v6 }
 0x148   :  { %1534 = vmatprep.subr.bf16.mxu1 %v1651_v6 }
 0x14b   :  { %1535 = vmatpush3.bf16.msra.mxu1 %v1651_v6 }
 0x14c   :  { %1536 = vmatprep.subr.bf16.mxu1 %v1651_v6 }
 0x14f   :  { %1537 = vmatpush3.bf16.msra.mxu1 %v1651_v6 }
 0x150   :  { %1538 = vmatprep.subr.bf16.mxu1 %v1651_v6 }
 0x153   :  { %1539 = vmatpush3.bf16.msra.mxu1 %v1651_v6 }
 0x154   :  { %1540 = vmatprep.subr.bf16.mxu1 %v1651_v6 }
 0x157   :  { %1541 = vmatpush3.bf16.msra.mxu1 %v1651_v6 }
 0x1ed   :  { %v1245_v33 = vpop.f32.mrb[0].mxu1 }
 0x1ee   :  { %v241_v34 = vpop.f32.mrb[1].mxu1  ;;  %v251_v35 = vmul.f32 0.0078125, %v1245_v33  ;;  %v38_v33 = vld [vmem:[%s1947_s1 + $0x60] sm:$0xff] }
 0x1ef   :  { %v250_v36 = vmul.f32 0.0078125, %v241_v34 }
 0x1f0   :  { %v332_v38 = vmul.f32 %v251_v35, %v251_v35 }
 0x1f1   :  { %v331_v41 = vmul.f32 %v250_v36, %v250_v36 }
 0x20d   :  { %v1280_v37 = vpop.f32.mrb[2].mxu1 }
 0x20e   :  { %v330_v39 = vmul.f32 0.0078125, %v1280_v37  ;;  %v320_v40 = vpop.f32.mrb[3].mxu1 }
 0x20f   :  { %v329_v42 = vmul.f32 0.0078125, %v320_v40  ;;  %v40_v40 = vld [vmem:[%s1947_s1 + $0x70] sm:$0xff] }
 0x210   :  { %v334_v43 = vsub.f32 %v330_v39, %v332_v38  ;;  %v41_v38 = vld [vmem:[%s1947_s1 + $0x78] sm:$0x3] }
 0x211   :  { %v333_v44 = vsub.f32 %v329_v42, %v331_v41 }
 0x212   :  { %v336_v45 = vmax.f32 %v334_v43, 0.0 }
 0x213   :  { %v335_v46 = vmax.f32 %v333_v44, 0.0  ;;  %v1654_v44 = vmov 0.0|0.0  }
 0x214   :  { %v338_v47 = vadd.f32 1e-05, %v336_v45  ;;  %1558 = vmatprep.subr.bf16.mxu1 %v1654_v44  ;;  %v1656_v45 = vmov 0.0  }
 0x215   :  { %v337_v48 = vadd.f32 1e-05, %v335_v46 }
 0x216   :  { %1603 = vrsqrt.f32 %v338_v47 }
 0x217   :  { %1605 = vrsqrt.f32 %v337_v48 }
 0x220   :  { %v1604_v51 = vpop.eup %1603 }
 0x221   :  { %v1606_v52 = vpop.eup %1605  ;;  %v342_v53 = vmul.f32 %v1604_v51, %v35_v49 }
 0x222   :  { %v341_v54 = vmul.f32 %v1606_v52, %v34_v50 }
 0x223   :  { %v344_v56 = vmul.f32 %v342_v53, %v251_v35 }
 0x224   :  { %349 = vperm.xlu0 %1601, %v341_v54   ;;  %v343_v57 = vmul.f32 %v341_v54, %v250_v36 }
 0x225   :  { %v346_v60 = vsub.f32 %v37_v59, %v344_v56 }
 0x226   :  { %v345_v58 = vsub.f32 %v36_v55, %v343_v57  ;;  %v32_v57 = vld [vmem:[%s1947_s1 + $0x20] sm:$0x3f] }
 0x228   :  { %354 = vperm.xlu0 %1601, %v342_v53   ;;  %361 = vperm.xlu1 %1602, %v345_v58  }
 0x22c   :  { %366 = vperm.xlu1 %1602, %v346_v60  }
 0x2a3   :  { %v350_v62 = vpop.permute.xlu0 %349 }
 0x2a4   :  { %v357_v63 = vmul.f32 %v350_v62, %v1786_v29 }
 0x2a7   :  { %v355_v0 = vpop.permute.xlu0 %354  ;;  %v362_v1 = vpop.permute.xlu1 %361 }
 0x2a8   :  { %v369_v2 = vadd.f32 %v362_v1, %v357_v63  ;;  %v358_v3 = vmul.f32 %v1784_v28, %v355_v0 }
 0x2aa   :  { %1607 = vtanh.f32 %v369_v2 }
 0x2ab   :  { %v367_v4 = vpop.permute.xlu1 %366 }
 0x2ac   :  { %v370_v5 = vadd.f32 %v367_v4, %v358_v3 }
 0x2ae   :  { %1609 = vtanh.f32 %v370_v5 }
 0x2b4   :  { %v1608_v7 = vpop.eup %1607 }
 0x2b8   :  { %v1610_v8 = vpop.eup %1609 }
 0x2b9   :  { %v1520_v10 = vpack.c.bf16 %v1610_v8, %v1608_v7 }
 0x2bb   :  { %1522 = vmatprep.subr.msk.bf16.mxu0 %vm1843_vm5, %v1520_v10 }
 0x2bc   :  { %1525 = vmatpush3.bf16.msk.msra.mxu0 %vm1843_vm5, %v1520_v10  ;;  %v43_v10 = vld [vmem:[%s1947_s1 + $0x90] sm:$0x3f] }
 0x2bd   :  { %1542 = vmatprep.subr.bf16.mxu0 %v1651_v6 }
 0x2bf   :  { %1286 = vmatmul.mubr.msk.f32.vlgmr.msra.gmra.mrb[2].mxu0 %vm373_vm2, %v31_v11 }
 0x2c0   :  { %1543 = vmatpush3.bf16.msra.mxu0 %v1651_v6 }
 0x2c1   :  { %1544 = vmatprep.subr.bf16.mxu0 %v1651_v6 }
 0x2c4   :  { %1545 = vmatpush3.bf16.msra.mxu0 %v1651_v6 }
 0x2c5   :  { %1546 = vmatprep.subr.bf16.mxu0 %v1651_v6 }
 0x2c8   :  { %1547 = vmatpush3.bf16.msra.mxu0 %v1651_v6 }
 0x2c9   :  { %1548 = vmatprep.subr.bf16.mxu0 %v1651_v6 }
 0x2cc   :  { %1549 = vmatpush3.bf16.msra.mxu0 %v1651_v6 }
 0x2cd   :  { %1550 = vmatprep.subr.bf16.mxu0 %v1651_v6 }
 0x2d0   :  { %1551 = vmatpush3.bf16.msra.mxu0 %v1651_v6 }
 0x2d1   :  { %1552 = vmatprep.subr.bf16.mxu0 %v1651_v6 }
 0x2d4   :  { %1553 = vmatpush3.bf16.msra.mxu0 %v1651_v6 }
 0x2d5   :  { %1554 = vmatprep.subr.bf16.mxu0 %v1651_v6 }
 0x2d8   :  { %1555 = vmatpush3.bf16.msra.mxu0 %v1651_v6 }
 0x2d9   :  { %1556 = vmatprep.subr.bf16.mxu0 %v1651_v6 }
 0x2dc   :  { %1557 = vmatpush3.bf16.msra.mxu0 %v1651_v6 }
 0x2dd   :  { %1562 = vmatprep.subr.bf16.mxu0 %v1654_v44 }
 0x392   :  { %v1871_v12 = vpop.f32.mrb[2].mxu0 }
 0x393   :  { %v1873_v13 = vpop.f32.mrb[3].mxu0  ;;  %v537_v15 = vmul.f32 %v1871_v12, %v1871_v12 }
 0x394   :  { %v536_v14 = vmul.f32 %v1873_v13, %v1873_v13  ;;  %1320 = vmatprep.mubr.f32.mxu1 %v1873_v13 }
 0x395   :  { %1321 = vmatmul.mubr.f32.vlgmr.msra.gmra.mrb[4].mxu1 %v1871_v12 }
 0x396   :  { %1355 = vmatprep.mubr.f32.mxu0 %v536_v14  ;;  %1362 = vmatprep.mubr.msk.f32.mxu1 %vm1655_vm6, %v1656_v45 }
 0x397   :  { %1356 = vmatmul.mubr.f32.vlgmr.msra.gmra.mrb[4].mxu0 %v537_v15 }
 0x398   :  { %1563 = vmatpush3.bf16.msra.mxu0 %v1651_v6  ;;  %1397 = vmatprep.mubr.msk.f32.mxu0 %vm1655_vm6, %v1656_v45 }
 0x399   :  { %1564 = vmatprep.subr.bf16.mxu0 %v1654_v44 }
 0x39c   :  { %1565 = vmatpush3.bf16.msra.mxu0 %v1651_v6 }
 0x39d   :  { %1566 = vmatprep.subr.bf16.mxu0 %v1654_v44 }
 0x3a0   :  { %1567 = vmatpush3.bf16.msra.mxu0 %v1651_v6 }
 0x3a1   :  { %1568 = vmatprep.subr.bf16.mxu0 %v1654_v44 }
 0x3a4   :  { %1569 = vmatpush3.bf16.msra.mxu0 %v1651_v6 }
 0x3a5   :  { %1570 = vmatprep.subr.bf16.mxu0 %v1654_v44 }
 0x3a8   :  { %1571 = vmatpush3.bf16.msra.mxu0 %v1651_v6 }
 0x3a9   :  { %1572 = vmatprep.subr.bf16.mxu0 %v1654_v44 }
 0x3ac   :  { %1573 = vmatpush3.bf16.msra.mxu0 %v1651_v6 }
 0x3ad   :  { %1574 = vmatprep.subr.bf16.mxu0 %v1654_v44 }
 0x3b0   :  { %1575 = vmatpush3.bf16.msra.mxu0 %v1651_v6 }
 0x3b1   :  { %1576 = vmatprep.subr.bf16.mxu0 %v1654_v44 }
 0x3b4   :  { %1577 = vmatpush3.bf16.msra.mxu0 %v1651_v6 }
 0x3b5   :  { %1435 = vmatprep.subr.mxu0 %v1656_v45 }
 0x468   :  { %v1322_v16 = vpop.f32.mrb[4].mxu1 }
 0x469   :  { %v535_v17 = vmul.f32 0.0078125, %v1322_v16  ;;  %v525_v18 = vpop.f32.mrb[5].mxu1 }
 0x46a   :  { %v534_v19 = vmul.f32 0.0078125, %v525_v18  ;;  %v1357_v20 = vpop.f32.mrb[4].mxu0  ;;  %v33_v18 = vld [vmem:[%s1947_s1 + $0x30] sm:$0x3] }
 0x46b   :  { %v616_v21 = vmul.f32 %v535_v17, %v535_v17  ;;  %v614_v22 = vmul.f32 0.0078125, %v1357_v20  ;;  %v604_v23 = vpop.f32.mrb[5].mxu0 }
 0x46c   :  { %v615_v24 = vmul.f32 %v534_v19, %v534_v19  ;;  %v613_v25 = vmul.f32 0.0078125, %v604_v23 }
 0x46d   :  { %v618_v26 = vsub.f32 %v614_v22, %v616_v21 }
 0x46e   :  { %v617_v27 = vsub.f32 %v613_v25, %v615_v24 }
 0x46f   :  { %v620_v28 = vmax.f32 %v618_v26, 0.0 }
 0x470   :  { %v619_v29 = vmax.f32 %v617_v27, 0.0 }
 0x471   :  { %v622_v30 = vadd.f32 1e-05, %v620_v28 }
 0x472   :  { %v621_v31 = vadd.f32 1e-05, %v619_v29 }
 0x473   :  { %1611 = vrsqrt.f32 %v622_v30 }
 0x474   :  { %1613 = vrsqrt.f32 %v621_v31 }
 0x47d   :  { %v1612_v34 = vpop.eup %1611 }
 0x47e   :  { %v1614_v35 = vpop.eup %1613  ;;  %v626_v36 = vmul.f32 %v1612_v34, %v39_v32  ;;  %v998_v32 = vlaneseq }
 0x47f   :  { %v625_v37 = vmul.f32 %v1614_v35, %v38_v33 }
 0x480   :  { %638 = vperm.xlu1 %1602, %v626_v36   ;;  %v628_v39 = vmul.f32 %v626_v36, %v535_v17  ;;  %v999_v35 = vshrl.u32 %v998_v32, 7 }
 0x481   :  { %633 = vperm.xlu0 %1601, %v625_v37   ;;  %v627_v41 = vmul.f32 %v625_v37, %v534_v19 }
 0x482   :  { %v630_v42 = vsub.f32 %v41_v38, %v628_v39 }
 0x483   :  { %v629_v43 = vsub.f32 %v40_v40, %v627_v41  ;;  %v1000_v40 = vsub.s32 0, %v999_v35 }
 0x484   :  { %650 = vperm.xlu1 %1602, %v630_v42  }
 0x485   :  { %645 = vperm.xlu0 %1601, %v629_v43  }
 0x4ff   :  { %v639_v46 = vpop.permute.xlu1 %638 }
 0x500   :  { %v634_v47 = vpop.permute.xlu0 %633  ;;  %v642_v48 = vmul.f32 %v1871_v12, %v639_v46  ;;  %v44_v12 = vld [vmem:[%s1947_s1 + $0xa0] sm:$0x3] }
 0x501   :  { %v641_v49 = vmul.f32 %v634_v47, %v1873_v13 }
 0x503   :  { %v651_v50 = vpop.permute.xlu1 %650 }
 0x504   :  { %v654_v51 = vadd.f32 %v651_v50, %v642_v48  ;;  %v646_v52 = vpop.permute.xlu0 %645 }
 0x505   :  { %v653_v53 = vadd.f32 %v646_v52, %v641_v49 }
 0x506   :  { %1615 = vtanh.f32 %v654_v51 }
 0x507   :  { %1617 = vtanh.f32 %v653_v53 }
 0x510   :  { %v1616_v54 = vpop.eup %1615 }
 0x511   :  { %v1618_v55 = vpop.eup %1617 }
 0x512   :  { %v1559_v56 = vpack.c.bf16 %v1616_v54, %v1618_v55 }
 0x514   :  { %1561 = vmatpush3.bf16.msk.msra.mxu1 %vm1843_vm5, %v1559_v56 }
 0x515   :  { %1578 = vmatprep.subr.bf16.mxu1 %v1654_v44 }
 0x517   :  { %1363 = vmatmul.mubr.msk.f32.vlgmr.msra.gmra.mrb[6].mxu1 %vm373_vm2, %v32_v57 }
 0x518   :  { %1579 = vmatpush3.bf16.msra.mxu1 %v1651_v6  ;;  %1432 = vmatprep.mubr.msk.f32.mxu1 %vm1655_vm6, %v1656_v45 }
 0x519   :  { %1580 = vmatprep.subr.bf16.mxu1 %v1654_v44 }
 0x51c   :  { %1581 = vmatpush3.bf16.msra.mxu1 %v1651_v6 }
 0x51d   :  { %1582 = vmatprep.subr.bf16.mxu1 %v1654_v44 }
 0x520   :  { %1583 = vmatpush3.bf16.msra.mxu1 %v1651_v6 }
 0x521   :  { %1584 = vmatprep.subr.bf16.mxu1 %v1654_v44 }
 0x524   :  { %1585 = vmatpush3.bf16.msra.mxu1 %v1651_v6 }
 0x525   :  { %1586 = vmatprep.subr.bf16.mxu1 %v1654_v44 }
 0x528   :  { %1587 = vmatpush3.bf16.msra.mxu1 %v1651_v6 }
 0x529   :  { %1588 = vmatprep.subr.bf16.mxu1 %v1654_v44 }
 0x52c   :  { %1589 = vmatpush3.bf16.msra.mxu1 %v1651_v6 }
 0x52d   :  { %1590 = vmatprep.subr.bf16.mxu1 %v1654_v44 }
 0x530   :  { %1591 = vmatpush3.bf16.msra.mxu1 %v1651_v6 }
 0x531   :  { %1592 = vmatprep.subr.bf16.mxu1 %v1654_v44 }
 0x534   :  { %1593 = vmatpush3.bf16.msra.mxu1 %v1651_v6  ;;  %v42_v6 = vld [vmem:[%s1947_s1 + $0x80] sm:$0x3f]  ;;  %s1657_s1 = smov [#allocation2]  }
 0x535   :  { %s1010_s17 = sshll.u32 %s1657_s1, 4  ;;  %s1011_s17 = int_to_ptr.vmem [resolvable:$true] %s1010_s17 }
 0x536   :  { %s1627_s18 = scalar_lea.vmem %s1011_s17, 32  ;;  %p1632_p1 = scmp.lt.s32.totalorder %s1011_s17, %s1011_s17 }
 0x537   :  { %p1628_p0 = scmp.ne.s32.totalorder %s1011_s17, %s1627_s18  ;;  %p1633_p2 = scmp.lt.s32.totalorder %s1627_s18, %s1627_s18 }
 0x539   :  { %p1634_p3 = por %p1633_p2, %p1632_p1 }
 0x53b   :  { %p1635_p4 = pnand %p1634_p3, %p1628_p0 }
 0x5ea   :  { %v729_v58 = vpop.f32.mrb[6].mxu1 }
 0x5eb   :  { %v804_v59 = vmul.f32 %v729_v58, %v729_v58  ;;  %v1364_v60 = vpop.f32.mrb[7].mxu1  ;;  %1398 = vmatmul.mubr.f32.vlgmr.msra.gmra.mrb[6].mxu0 %v729_v58 }
 0x5ec   :  { %1437 = vmatprep.mubr.msk.f32.mxu0 %vm1655_vm6, %v1656_v45 }
 0x5ed   :  { %1433 = vmatmul.mubr.f32.vlgmr.msra.gmra.mrb[8].mxu1 %v804_v59 }
 0x6be   :  { %v799_v61 = vpop.f32.mrb[6].mxu0 }
 0x6bf   :  { %v803_v62 = vmul.f32 0.0078125, %v799_v61  ;;  %v1399_v63 = vpop.f32.mrb[7].mxu0 }
 0x6c0   :  { %v871_v0 = vpop.f32.mrb[8].mxu1 }
 0x6c1   :  { %v876_v1 = vmul.f32 %v803_v62, %v803_v62  ;;  %v875_v2 = vmul.f32 0.0078125, %v871_v0  ;;  %v1434_v3 = vpop.f32.mrb[9].mxu1 }
 0x6c3   :  { %v877_v4 = vsub.f32 %v875_v2, %v876_v1 }
 0x6c5   :  { %v878_v5 = vmax.f32 %v877_v4, 0.0 }
 0x6c7   :  { %v879_v7 = vadd.f32 1e-05, %v878_v5 }
 0x6c9   :  { %1619 = vrsqrt.f32 %v879_v7 }
 0x6d3   :  { %v1620_v8 = vpop.eup %1619 }
 0x6d4   :  { %v881_v9 = vmul.f32 %v1620_v8, %v42_v6 }
 0x6d6   :  { %886 = vperm.xlu0 %1601, %v881_v9   ;;  %v882_v11 = vmul.f32 %v881_v9, %v803_v62 }
 0x6d8   :  { %v883_v13 = vsub.f32 %v43_v10, %v882_v11 }
 0x6da   :  { %899 = vperm.xlu0 %1601, %v44_v12   ;;  %892 = vperm.xlu1 %1602, %v883_v13  }
 0x755   :  { %v887_v14 = vpop.permute.xlu0 %886 }
 0x756   :  { %v889_v15 = vmul.f32 %v887_v14, %v729_v58 }
 0x759   :  { %v893_v16 = vpop.permute.xlu1 %892  ;;  %v900_v20 = vpop.permute.xlu0 %899 }
 0x75a   :  { %v895_v17 = vadd.f32 %v893_v16, %v889_v15 }
 0x75c   :  { %1621 = vtanh.f32 %v895_v17 }
 0x766   :  { %v1622_v19 = vpop.eup %1621 }
 0x767   :  { %1436 = vmatpush3.msk.msra.mxu0 %vm905_vm7, %v1622_v19 }
 0x768   :  { %1438 = vmatmul.mubr.msk.f32.vlgmr.msra.gmra.mrb[8].mxu0 %vm45_vm0, %v33_v18 }
 0x83b   :  { %v975_v21 = vpop.f32.mrb[8].mxu0 }
 0x83c   :  { %v976_v22 = vadd.f32 %v975_v21, %v900_v20  ;;  %v1439_v23 = vpop.f32.mrb[9].mxu0 }
 0x83e   :  { %v980_v24 = vrot.slane %v976_v22, 1 }
 0x840   :  { %v983_v25 = vsub.f32 %v976_v22, %v980_v24  ;;  %v982_v39 = vmax.f32 %v976_v22, %v980_v24 }
 0x842   :  { %v984_v26 = vand.u32 2147483647, %v983_v25 }
 0x844   :  { %v985_v27 = vsub.f32 0.0, %v984_v26 }
 0x846   :  { %v986_v28 = vmul.f32 1.442695, %v985_v27 }
 0x848   :  { %1623 = vpow2.f32 %v986_v28 }
 0x852   :  { %v1624_v29 = vpop.eup %1623 }
 0x853   :  { %v988_v30 = vadd.f32 1.0, %v1624_v29  ;;  %v991_v31 = vmul.f32 -0.5, %v1624_v29  ;;  %v994_v34 = vand.u32 2147483647, %v1624_v29 }
 0x855   :  { %1625 = vlog2.f32 %v988_v30  ;;  %v992_v33 = vadd.f32 1.0, %v991_v31  ;;  %vm995_vm8 = vcmp.lt.f32.partialorder %v994_v34, 0.0004427343 }
 0x857   :  { %v993_v38 = vmul.f32 %v1624_v29, %v992_v33 }
 0x85f   :  { %v1626_v36 = vpop.eup %1625 }
 0x860   :  { %v990_v37 = vmul.f32 0.6931472, %v1626_v36 }
 0x862   :  { %v996_v41 = vsel %vm995_vm8, %v993_v38, %v990_v37 }
 0x863   :  { %v997_v42 = vadd.f32 %v996_v41, %v982_v39 }
 0x865   :  { %v1001_v43 = vrot.slane %v997_v42, %v1000_v40 }
 0x867   :  { %v1002_v44 = vsub.f32 %v976_v22, %v1001_v43 }
 0x869   :  { %1003 = vst [vmem:[#allocation2] sm:$0x3] %v1002_v44 }
 0x86a   :  { %1638 = shalt.err (!%p1635_p4)
}
 0x86b   :  { %s1639_s21 = scalar_lea.hbm %s1948_s2, 32 }
 0x86c   :  { %p1640_p5 = scmp.ne.s32.totalorder %s1948_s2, %s1639_s21  ;;  %p1643_p6 = scmp.lt.u32.totalorder %s1639_s21, %s1948_s2 }
 0x86e   :  { %p1645_p7 = pnand %p1643_p6, %p1640_p5 }
 0x870   :  { %1648 = shalt.err (!%p1645_p7)
}
 0x871   :  { %1013 = dma.vmem_to_hbm [thread:$0]  %s1011_s17, 32, %s1948_s2, [#allocation3]  }
 0x872   :  { %1649 = dma.done.wait [#allocation3], 32  }
 0x873   :  { %1650 = vsyncadd [#allocation3], 4294967264 }
 0x874   :  { %1017 = vsyncpa [#allocation3], 1 }

</bundles_post_ra>
